<compile_context>
chip_gen: v7x
topology: tpu7x:2x2x1
jax: 0.10.0
libtpu: 0.0.40
codegen_flags: <defaults>
</compile_context>

<pallas_src>
import functools

import jax
import jax.numpy as jnp
from jax.experimental import pallas as pl
from jax.experimental.pallas import tpu as pltpu


def _fused_embedding_kernel(vocab_offsets, idx_ref, table_ref, out_ref):
    """One batch tile: multi-hot build + single block-diagonal matmul.

    idx_ref:   (tb, F)            int32 in VMEM  (one column per feature)
    table_ref: (sum_V, sum_E)     f32   in VMEM  (block-diagonal, resident)
    out_ref:   (tb, sum_E)        f32   in VMEM  (already-concatenated block)
    """
    idx = idx_ref[...]                                    # (tb, F)
    tb = idx.shape[0]
    sum_v = table_ref.shape[0]

    # Multi-hot mask: row b has a 1 at (vocab_offsets[i] + idx[b, i]) for every
    # feature i.  Features own disjoint vocab ranges, so OR-ing per-feature
    # compares is exact.  Offsets are static Python ints (no 1-D constants).
    lane = jax.lax.broadcasted_iota(jnp.int32, (tb, sum_v), 1)
    hot = None
    for i, off in enumerate(vocab_offsets):
        hit = lane == (idx[:, i:i + 1] + off)             # (tb, sum_V) bool
        hot = hit if hot is None else jnp.logical_or(hot, hit)
    onehot = hot.astype(table_ref.dtype)

    # Single MXU push producing the concatenated slab.  Exactly one nonzero
    # per feature's output columns -> numerically exact vs. a gather.
    out_ref[...] = jnp.dot(
        onehot, table_ref[...], preferred_element_type=jnp.float32
    ).astype(out_ref.dtype)


def _pick_batch_tile(b, f, sum_v, total_e, table_bytes,
                     budget_bytes=32 * 1024 * 1024, max_tile=4096):
    """Largest power-of-two batch tile dividing B that fits the VMEM budget."""
    # Per-row bytes: 2x idx block (double-buffered) + 2x out block + compute
    # temporaries (multi-hot padded to >=128 lanes + f32 matmul result).
    per_row = (2 * f + 3 * total_e + max(sum_v, 128)) * 4
    avail = budget_bytes - table_bytes
    cap = max(8, avail // per_row) if avail > 0 else 8
    cap = min(cap, max_tile, b)
    tile = 8
    while tile * 2 <= cap:
        tile *= 2
    while tile >= 8:
        if b % tile == 0:
            return tile
        tile //= 2
    return b  # fallback: one full block (block_shape == array dims is legal)


def embedding_net_forward(inputs, packed_table, vocab_offsets):
    """inputs: (B, F) int; packed_table: (sum_V, sum_E) f32 block-diagonal."""
    assert inputs.ndim == 2
    f = len(vocab_offsets)
    assert inputs.shape[1] == f
    if f == 0:
        return None

    b = inputs.shape[0]
    sum_v, total_e = packed_table.shape
    idx = inputs.astype(jnp.int32)

    table_bytes = int(sum_v) * int(total_e) * 4
    tb = _pick_batch_tile(b, f, sum_v, total_e, table_bytes)
    grid = (b // tb,)

    # VMEM footprint: resident table (single-buffered) + pipelined idx/out
    # blocks + compute temporaries; generous headroom, clamped below v7x's
    # 64 MiB per-TC physical VMEM.
    per_row = (2 * f + 3 * total_e + max(sum_v, 128)) * 4
    footprint = table_bytes + tb * per_row
    vmem_limit = int(min(max(2 * footprint + (8 << 20), 16 << 20), 60 << 20))

    kernel = functools.partial(_fused_embedding_kernel, tuple(vocab_offsets))

    # Useful work is a gather: ~0 FLOPs, bytes = indices + tables + output.
    bytes_accessed = idx.size * 4 + table_bytes + b * total_e * 4

    return pl.pallas_call(
        kernel,
        out_shape=jax.ShapeDtypeStruct((b, total_e), jnp.float32),
        grid_spec=pltpu.PrefetchScalarGridSpec(
            num_scalar_prefetch=0,
            grid=grid,
            in_specs=[
                pl.BlockSpec((tb, f), lambda bi: (bi, 0)),           # indices
                pl.BlockSpec((sum_v, total_e), lambda bi: (0, 0),    # table:
                             pipeline_mode=pl.Buffered(1)),          # resident, 1 buf
            ],
            out_specs=pl.BlockSpec((tb, total_e), lambda bi: (bi, 0)),
        ),
        compiler_params=pltpu.CompilerParams(
            dimension_semantics=("parallel",),
            vmem_limit_bytes=vmem_limit),
        cost_estimate=pl.CostEstimate(
            flops=0, transcendentals=0, bytes_accessed=bytes_accessed),
    )(idx, packed_table)


class EmbeddingNetPallas:
    """JAX/Pallas equivalent of torches EmbeddingNet (max_norm=None path)."""

    def __init__(self, conf, key):
        # nn.Embedding default init: weight ~ N(0, 1)
        self.conf = tuple((int(v), int(e)) for v, e in conf)
        tables = []
        for (e_values, e_size) in self.conf:
            key, sub = jax.random.split(key)
            tables.append(
                jax.random.normal(sub, (e_values, e_size), dtype=jnp.float32))
        self.tables = tables

        # Static per-feature vocab offsets (baked into the kernel as ints).
        offs, acc = [], 0
        for (v, _) in self.conf:
            offs.append(acc)
            acc += v
        self.vocab_offsets = tuple(offs)

        # Pack tables ONCE into a block-diagonal (sum_V, sum_E) matrix so the
        # kernel does a single matmul producing the concatenated output.
        sum_v = acc
        sum_e = sum(e for _, e in self.conf)
        if self.conf:
            packed = jnp.zeros((sum_v, sum_e), dtype=jnp.float32)
            ro = co = 0
            for t in tables:
                v, e = t.shape
                packed = packed.at[ro:ro + v, co:co + e].set(t)
                ro += v
                co += e
            self.packed_table = packed
        else:
            self.packed_table = None

    def __call__(self, inputs):
        assert inputs.ndim == 2
        assert inputs.shape[1] == len(self.conf)
        if not len(self.conf):
            return None
        return embedding_net_forward(inputs, self.packed_table,
                                     self.vocab_offsets)


def _reference(inputs, tables):
    """Pure-JAX reference for correctness check."""
    inputs = inputs.astype(jnp.int32)
    outs = [jnp.take(t, inputs[:, i], axis=0) for i, t in enumerate(tables)]
    return jnp.concatenate(outs, axis=1)


if __name__ == "__main__":
    key = jax.random.PRNGKey(0)

    # conf: list of (num_embeddings, embedding_dim) per feature
    conf = [(11, 8), (7, 4), (5, 16), (23, 4)]
    batch = 8

    key, k_model, k_idx = jax.random.split(key, 3)
    net = EmbeddingNetPallas(conf, k_model)

    # Deterministic integer inputs, one column per feature, each within that
    # feature's vocabulary size.
    cols = []
    for (e_values, _) in conf:
        k_idx, sub = jax.random.split(k_idx)
        cols.append(jax.random.randint(sub, (batch,), 0, e_values,
                                       dtype=jnp.int32))
    x = jnp.stack(cols, axis=1)  # (B, F)

    out = net(x)
    out = jax.block_until_ready(out)

    expected_dim = sum(e for _, e in conf)
    assert out.shape == (batch, expected_dim), out.shape

    ref = _reference(x, net.tables)
    assert jnp.allclose(out, ref, atol=1e-5, rtol=1e-5), "mismatch vs reference"

    print("KERNEL_OK")
</pallas_src>

<mosaic_0001>
module attributes {stable_mosaic.version = 11 : i64} {
  func.func @_fused_embedding_kernel(%arg0: i32, %arg1: memref<8x4xi32, #tpu.memory_space<vmem>>, %arg2: memref<46x32xf32, #tpu.memory_space<vmem>>, %arg3: memref<8x32xf32, #tpu.memory_space<vmem>>) attributes {dimension_semantics = [#tpu.dimension_semantics<parallel>], iteration_bounds = array<i64: 1>, scalar_prefetch = 0 : i64, scratch_operands = 0 : i64, tpu.core_type = #tpu.core_type<tc>, window_params = [{transform_indices = @transform_0, window_bounds = array<i64: 8, 4>}, {pipeline_mode = #tpu.pipeline_mode<synchronous>, transform_indices = @transform_1, window_bounds = array<i64: 46, 32>}, {transform_indices = @transform_2, window_bounds = array<i64: 8, 32>}]} {
    %c0 = arith.constant 0 : index
    %c0_0 = arith.constant 0 : index
    %0 = vector.load %arg1[%c0, %c0_0] : memref<8x4xi32, #tpu.memory_space<vmem>>, vector<8x4xi32>
    %1 = tpu.iota {dimensions = array<i32: 1>} : vector<8x46xi32>
    %2 = vector.extract_strided_slice %0 {offsets = [0, 0], sizes = [8, 1], strides = [1, 1]} : vector<8x4xi32> to vector<8x1xi32>
    %c0_i32 = arith.constant 0 : i32
    %3 = vector.broadcast %c0_i32 : i32 to vector<8x1xi32>
    %4 = arith.addi %2, %3 : vector<8x1xi32>
    %5 = vector.broadcast %4 : vector<8x1xi32> to vector<8x46xi32>
    %6 = arith.cmpi eq, %1, %5 : vector<8x46xi32>
    %7 = vector.extract_strided_slice %0 {offsets = [0, 1], sizes = [8, 1], strides = [1, 1]} : vector<8x4xi32> to vector<8x1xi32>
    %c11_i32 = arith.constant 11 : i32
    %8 = vector.broadcast %c11_i32 : i32 to vector<8x1xi32>
    %9 = arith.addi %7, %8 : vector<8x1xi32>
    %10 = vector.broadcast %9 : vector<8x1xi32> to vector<8x46xi32>
    %11 = arith.cmpi eq, %1, %10 : vector<8x46xi32>
    %12 = arith.ori %6, %11 : vector<8x46xi1>
    %13 = vector.extract_strided_slice %0 {offsets = [0, 2], sizes = [8, 1], strides = [1, 1]} : vector<8x4xi32> to vector<8x1xi32>
    %c18_i32 = arith.constant 18 : i32
    %14 = vector.broadcast %c18_i32 : i32 to vector<8x1xi32>
    %15 = arith.addi %13, %14 : vector<8x1xi32>
    %16 = vector.broadcast %15 : vector<8x1xi32> to vector<8x46xi32>
    %17 = arith.cmpi eq, %1, %16 : vector<8x46xi32>
    %18 = arith.ori %12, %17 : vector<8x46xi1>
    %19 = vector.extract_strided_slice %0 {offsets = [0, 3], sizes = [8, 1], strides = [1, 1]} : vector<8x4xi32> to vector<8x1xi32>
    %c23_i32 = arith.constant 23 : i32
    %20 = vector.broadcast %c23_i32 : i32 to vector<8x1xi32>
    %21 = arith.addi %19, %20 : vector<8x1xi32>
    %22 = vector.broadcast %21 : vector<8x1xi32> to vector<8x46xi32>
    %23 = arith.cmpi eq, %1, %22 : vector<8x46xi32>
    %24 = arith.ori %18, %23 : vector<8x46xi1>
    %25 = arith.extui %24 : vector<8x46xi1> to vector<8x46xi32>
    %26 = arith.sitofp %25 : vector<8x46xi32> to vector<8x46xf32>
    %c0_1 = arith.constant 0 : index
    %c0_2 = arith.constant 0 : index
    %27 = vector.load %arg2[%c0_1, %c0_2] : memref<46x32xf32, #tpu.memory_space<vmem>>, vector<46x32xf32>
    %cst = arith.constant dense<0.000000e+00> : vector<8x32xf32>
    %28 = tpu.matmul %26, %27, %cst {dimension_numbers = #tpu.dot_dimension_numbers<[1], [0], [0], [1], [0, 0, 1, 1], [], []>} : vector<8x46xf32>, vector<46x32xf32>, vector<8x32xf32> -> vector<8x32xf32>
    %c0_3 = arith.constant 0 : index
    %c0_4 = arith.constant 0 : index
    %29 = vector.load %arg3[%c0_3, %c0_4] : memref<8x32xf32, #tpu.memory_space<vmem>>, vector<8x32xf32>
    tpu.vector_store %arg3[%c0_3, %c0_4], %28 {strides = array<i32>} : memref<8x32xf32, #tpu.memory_space<vmem>>, vector<8x32xf32>,
    return
  }
  func.func @transform_0(%arg0: i32) -> (i32, i32) {
    %c0_i32 = arith.constant 0 : i32
    %c0_i32_0 = arith.constant 0 : i32
    return %arg0, %c0_i32 : i32, i32
  }
  func.func @transform_1(%arg0: i32) -> (i32, i32) {
    %c0_i32 = arith.constant 0 : i32
    %c0_i32_0 = arith.constant 0 : i32
    %c0_i32_1 = arith.constant 0 : i32
    return %c0_i32, %c0_i32_0 : i32, i32
  }
  func.func @transform_2(%arg0: i32) -> (i32, i32) {
    %c0_i32 = arith.constant 0 : i32
    %c0_i32_0 = arith.constant 0 : i32
    return %arg0, %c0_i32 : i32, i32
  }
}

</mosaic_0001>

<bundles_post_ra>
// kernel: tpu_custom_call.1
= control target key start
LH: loop header
LB: loop body
LE: loop exit
PB: predicated region body
PF: predicated region fallthrough
CT: control target
= control target key end

     0   :  { %v212_v2 = vmov 0   ;;  %v213_v3 = vmov 2   ;;  %v214_v6 = vmov 0.0|0.0   ;;  %s269_s0 = inlined_call_operand.vmem [shape: s32[8,4], index: 0, kind: input, shape index: {}]   ;;  %s270_s1 = inlined_call_operand.vmem [shape: f32[46,32], index: 1, kind: input, shape index: {}]   ;;  %s271_s2 = inlined_call_operand.hbm [shape: f32[8,32], index: 2, kind: output, shape index: {}]  }
   0x1   :  { %v12_v0 = vld [vmem:[%s269_s0] sm:$0xff]  ;;  %183 = vset.pattern.permute.xlu0 %v212_v2  ;;  %185 = vset.pattern.permute.xlu1 %v213_v3  ;;  %v40_v5 = vld [vmem:[%s270_s1 + $0x8] sm:$0xff]  ;;  %v41_v8 = vld [vmem:[%s270_s1 + $0x10] sm:$0xff] }
   0x2   :  { %v39_v1 = vld [vmem:[%s270_s1] sm:$0xff]  ;;  %v25_v4 = vadd.s32 18, %v12_v0  ;;  %16 = vperm.xlu0 %183, %v12_v0   ;;  %164 = vmatprep.subr.bf16.mxu0 %v214_v6  ;;  %v42_v9 = vld [vmem:[%s270_s1 + $0x18] sm:$0xff] }
   0x3   :  { %v165_v7 = vpack.c.bf16 %v40_v5, %v39_v1 }
   0x4   :  { %7 = vsyncpa [#allocation3], 0  ;;  %27 = vperm.xlu1 %185, %v25_v4   ;;  %v19_v10 = vadd.s32 11, %v12_v0  ;;  %v31_v11 = vadd.s32 23, %v12_v0  ;;  %v168_v12 = vpack.c.bf16 %v42_v9, %v41_v8  ;;  %v215_v13 = vmov 1   ;;  %v43_v14 = vld [vmem:[%s270_s1 + $0x20] sm:$0xff] }
   0x5   :  { %166 = vmatpush3.bf16.msra.mxu0 %v165_v7  ;;  %v44_v15 = vld [vmem:[%s270_s1 + $0x28] sm:$0x3f]  ;;  %v216_v16 = vmov 3   ;;  %vm49_vm0 = vcmask 1045504   ;;  %vm217_vm1 = vmmov 1   ;;  %vm218_vm3 = vmmov 0  }
   0x6   :  { %167 = vmatprep.subr.bf16.mxu0 %v214_v6  ;;  %184 = vset.pattern.permute.xlu0 %v215_v13  ;;  %v171_v17 = vpack.c.bf16 %v44_v15, %v43_v14  ;;  %vm172_vm2 = vmpackc.low %vm49_vm0, %vm217_vm1  ;;  %v219_v18 = vmov 0.0   ;;  %v13_v19 = vlaneseq  ;;  %vm45_vm10 = vcmask 375808   ;;  %s220_s1 = smov [#allocation2]  }
   0x7   :  { %21 = vperm.xlu0 %184, %v19_v10   ;;  %161 = vmatprep.mubr.msk.f32.mxu0 %vm218_vm3, %v219_v18  ;;  %s131_s22 = sshll.u32 %s220_s1, 4  ;;  %vm123_vm12 = vcmask 261120   ;;  %s132_s22 = int_to_ptr.vmem [resolvable:$true] %s131_s22 }
   0x8   :  { %186 = vset.pattern.permute.xlu1 %v216_v16  ;;  %v14_v22 = vand.u32 127, %v13_v19  ;;  %s188_s23 = scalar_lea.vmem %s132_s22, 128  ;;  %p193_p1 = scmp.lt.s32.totalorder %s132_s22, %s132_s22 }
   0x9   :  { %33 = vperm.xlu1 %186, %v31_v11   ;;  %169 = vmatpush3.bf16.msra.mxu0 %v168_v12  ;;  %p189_p0 = scmp.ne.s32.totalorder %s132_s22, %s188_s23  ;;  %p194_p2 = scmp.lt.s32.totalorder %s188_s23, %s188_s23 }
   0xa   :  { %170 = vmatprep.subr.bf16.mxu0 %v214_v6 }
   0xb   :  { %187 = vset.pattern.permute.xlu0 %v216_v16  ;;  %p195_p3 = por %p194_p2, %p193_p1 }
   0xd   :  { %173 = vmatpush3.bf16.msk.msra.mxu0 %vm172_vm2, %v171_v17  ;;  %p196_p4 = pnand %p195_p3, %p189_p0 }
  0x81   :  { %v17_v20 = vpop.permute.xlu0 %16 }
  0x82   :  { %vm18_vm4 = vcmp.eq.s32.totalorder %v14_v22, %v17_v20 }
  0x83   :  { %v28_v21 = vpop.permute.xlu1 %27 }
  0x84   :  { %vm29_vm6 = vcmp.eq.s32.totalorder %v14_v22, %v28_v21 }
  0x86   :  { %v22_v23 = vpop.permute.xlu0 %21 }
  0x87   :  { %vm23_vm5 = vcmp.eq.s32.totalorder %v14_v22, %v22_v23 }
  0x88   :  { %v34_v24 = vpop.permute.xlu1 %33  ;;  %vm24_vm7 = vmor %vm18_vm4, %vm23_vm5 }
  0x89   :  { %vm35_vm8 = vcmp.eq.s32.totalorder %v14_v22, %v34_v24  ;;  %vm30_vm9 = vmor %vm24_vm7, %vm29_vm6 }
  0x8a   :  { %vm36_vm11 = vmor %vm30_vm9, %vm35_vm8 }
  0x8b   :  { %v139_v25 = vsel %vm36_vm11, 1.0, %v219_v18 }
  0x8c   :  { %162 = vmatmul.mubr.msk.f32.vlgmr.msra.gmra.mrb[0].mxu0 %vm45_vm10, %v139_v25 }
 0x15f   :  { %v119_v26 = vpop.f32.mrb[0].mxu0 }
 0x160   :  { %124 = vst.msk [vmem:[#allocation2] sm:$0xff] %vm123_vm12, %v119_v26  ;;  %v163_v27 = vpop.f32.mrb[1].mxu0 }
 0x161   :  { %199 = shalt.err (!%p196_p4)
}
 0x162   :  { %s200_s26 = scalar_lea.hbm %s271_s2, 128 }
 0x163   :  { %p201_p5 = scmp.ne.s32.totalorder %s271_s2, %s200_s26  ;;  %p204_p6 = scmp.lt.u32.totalorder %s200_s26, %s271_s2 }
 0x165   :  { %p206_p7 = pnand %p204_p6, %p201_p5 }
 0x167   :  { %209 = shalt.err (!%p206_p7)
}
 0x168   :  { %134 = dma.vmem_to_hbm [thread:$0]  %s132_s22, 128, %s271_s2, [#allocation3]  }
 0x169   :  { %210 = dma.done.wait [#allocation3], 128  }
 0x16a   :  { %211 = vsyncadd [#allocation3], 4294967168 }
 0x16b   :  { %138 = vsyncpa [#allocation3], 1 }

</bundles_post_ra>
